<compile_context>
chip_gen: v7x
topology: tpu7x:2x2x1
jax: 0.10.0
libtpu: 0.0.40
codegen_flags: <defaults>
</compile_context>

<pallas_src>
import jax
import jax.numpy as jnp
from jax.experimental import pallas as pl
from jax.experimental.pallas import tpu as pltpu


def _mlp_kernel(x_ref, w1_ref, b1_ref, w2_ref, b2_ref, o_ref):
    # x_ref : [2,  TB]  input tile, batch on the 128-wide lane axis
    # w1_ref: [50, 2]   fc1 weight (PyTorch [out, in] layout)
    # b1_ref: [50, 1]   fc1 bias (column vector, lane-broadcast)
    # w2_ref: [2,  50]  fc2 weight (PyTorch [out, in] layout)
    # b2_ref: [2,  1]   fc2 bias (column vector, lane-broadcast)
    # o_ref : [2,  TB]  output tile (lane-dense, single full store)
    hp = jax.lax.Precision.HIGHEST
    xt = x_ref[...]                                               # [2, TB]

    # fc1 on the MXU: [50, 2] @ [2, TB] -> [50, TB]; bias + ReLU on the VPU.
    h = jnp.dot(w1_ref[...], xt,
                preferred_element_type=jnp.float32, precision=hp)
    h = jnp.maximum(h + b1_ref[...], 0.0)                         # [50, TB]

    # fc2 on the MXU: [2, 50] @ [50, TB] -> [2, TB]; single full store.
    y = jnp.dot(w2_ref[...], h,
                preferred_element_type=jnp.float32, precision=hp)
    o_ref[...] = (y + b2_ref[...]).astype(o_ref.dtype)


def net_forward(x, w1, b1, w2, b2, *, tb=8192):
    """Forward pass of Net.

    x : [B, 2] float32
    Parameters use the PyTorch layout:
      w1: [50, 2], b1: [50], w2: [2, 50], b2: [2]
    Returns [B, 2].
    `tb` is the batch tile width (multiple of 128); 8192-16384 for large B.
    """
    B, f_in = x.shape
    hidden = w1.shape[0]
    f_out = w2.shape[0]

    # Lane-aligned batch tile.
    tb = max(128, (tb // 128) * 128)
    b_round = pl.cdiv(B, 128) * 128                    # B rounded up to lanes
    tb_eff = min(tb, b_round)
    if b_round > 128:
        # Cap the tile so the grid has >= 2 steps: lets the "parallel" grid
        # axis shard across both TensorCores on v7x (no-op on v5e/v6e).
        half = pl.cdiv(pl.cdiv(b_round, 2), 128) * 128
        tb_eff = min(tb_eff, max(half, 128))
    b_pad = pl.cdiv(B, tb_eff) * tb_eff
    grid = (b_pad // tb_eff,)

    # Lane-dense / DMA-friendly layouts. Layout plumbing stays in the wrapper;
    # x / y are only [B, 2], so these passes are negligible HBM traffic.
    x_t = x.T                                          # [2, B]
    if b_pad != B:
        x_t = jnp.pad(x_t, ((0, 0), (0, b_pad - B)))
    b1_c = b1.reshape(hidden, 1)                       # [50, 1]
    b2_c = b2.reshape(f_out, 1)                        # [2, 1]

    y_t = pl.pallas_call(
        _mlp_kernel,
        out_shape=jax.ShapeDtypeStruct((f_out, b_pad), x.dtype),
        grid=grid,
        in_specs=[
            pl.BlockSpec((f_in, tb_eff), lambda i: (0, i)),   # x^T tile (pipelined)
            pl.BlockSpec((hidden, f_in), lambda i: (0, 0)),   # w1 resident
            pl.BlockSpec((hidden, 1), lambda i: (0, 0)),      # b1 resident
            pl.BlockSpec((f_out, hidden), lambda i: (0, 0)),  # w2 resident
            pl.BlockSpec((f_out, 1), lambda i: (0, 0)),       # b2 resident
        ],
        out_specs=pl.BlockSpec((f_out, tb_eff), lambda i: (0, i)),
        compiler_params=pltpu.CompilerParams(
            dimension_semantics=("parallel",)),
    )(x_t, w1, b1_c, w2, b2_c)

    return y_t[:, :B].T                                # [B, 2]


def init_params(key):
    """PyTorch-layout params with Linear-default init (uniform +/- 1/sqrt(fan_in))."""
    k1, k2, k3, k4 = jax.random.split(key, 4)
    bound1 = 1.0 / jnp.sqrt(2.0)    # fc1 fan_in = 2
    bound2 = 1.0 / jnp.sqrt(50.0)   # fc2 fan_in = 50
    w1 = jax.random.uniform(k1, (50, 2), jnp.float32, -bound1, bound1)
    b1 = jax.random.uniform(k2, (50,), jnp.float32, -bound1, bound1)
    w2 = jax.random.uniform(k3, (2, 50), jnp.float32, -bound2, bound2)
    b2 = jax.random.uniform(k4, (2,), jnp.float32, -bound2, bound2)
    return w1, b1, w2, b2


def _reference(x, w1, b1, w2, b2):
    hp = jax.lax.Precision.HIGHEST
    h = jnp.maximum(jnp.dot(x, w1.T, precision=hp) + b1, 0.0)
    return jnp.dot(h, w2.T, precision=hp) + b2


if __name__ == "__main__":
    key = jax.random.PRNGKey(0)
    k_x, k_p = jax.random.split(key)

    B = 300  # deliberately not a multiple of 128 -> exercises tail padding
    x = jax.random.normal(k_x, (B, 2), jnp.float32)
    w1, b1, w2, b2 = init_params(k_p)

    ref = _reference(x, w1, b1, w2, b2)

    # Default path: tile capped so the grid has 2 steps (v7x megacore-friendly).
    out = jax.block_until_ready(net_forward(x, w1, b1, w2, b2))
    assert out.shape == (B, 2)
    assert jnp.allclose(out, ref, atol=1e-5, rtol=1e-5)

    # Multi-step grid path (small tile -> 3 grid steps, resident weights reused).
    out_small = jax.block_until_ready(net_forward(x, w1, b1, w2, b2, tb=128))
    assert jnp.allclose(out_small, ref, atol=1e-5, rtol=1e-5)

    print("KERNEL_OK")
</pallas_src>

<mosaic_0001>
module attributes {stable_mosaic.version = 11 : i64} {
  func.func @_mlp_kernel(%arg0: i32, %arg1: memref<2x256xf32, #tpu.memory_space<vmem>>, %arg2: memref<50x2xf32, #tpu.memory_space<vmem>>, %arg3: memref<50x1xf32, #tpu.memory_space<vmem>>, %arg4: memref<2x50xf32, #tpu.memory_space<vmem>>, %arg5: memref<2x1xf32, #tpu.memory_space<vmem>>, %arg6: memref<2x256xf32, #tpu.memory_space<vmem>>) attributes {dimension_semantics = [#tpu.dimension_semantics<parallel>], iteration_bounds = array<i64: 2>, scalar_prefetch = 0 : i64, scratch_operands = 0 : i64, tpu.core_type = #tpu.core_type<tc>, window_params = [{transform_indices = @transform_0, window_bounds = array<i64: 2, 256>}, {pipeline_mode = #tpu.pipeline_mode<synchronous>, transform_indices = @transform_1, window_bounds = array<i64: 50, 2>}, {pipeline_mode = #tpu.pipeline_mode<synchronous>, transform_indices = @transform_2, window_bounds = array<i64: 50, 1>}, {pipeline_mode = #tpu.pipeline_mode<synchronous>, transform_indices = @transform_3, window_bounds = array<i64: 2, 50>}, {pipeline_mode = #tpu.pipeline_mode<synchronous>, transform_indices = @transform_4, window_bounds = array<i64: 2, 1>}, {transform_indices = @transform_5, window_bounds = array<i64: 2, 256>}]} {
    %c0 = arith.constant 0 : index
    %c0_0 = arith.constant 0 : index
    %0 = vector.load %arg1[%c0, %c0_0] : memref<2x256xf32, #tpu.memory_space<vmem>>, vector<2x256xf32>
    %c0_1 = arith.constant 0 : index
    %c0_2 = arith.constant 0 : index
    %1 = vector.load %arg2[%c0_1, %c0_2] : memref<50x2xf32, #tpu.memory_space<vmem>>, vector<50x2xf32>
    %cst = arith.constant dense<0.000000e+00> : vector<50x256xf32>
    %2 = tpu.matmul %1, %0, %cst {dimension_numbers = #tpu.dot_dimension_numbers<[1], [0], [0], [1], [0, 0, 1, 1], [], []>, precision = #tpu.contract_precision<fp32>} : vector<50x2xf32>, vector<2x256xf32>, vector<50x256xf32> -> vector<50x256xf32>
    %c0_3 = arith.constant 0 : index
    %c0_4 = arith.constant 0 : index
    %3 = vector.load %arg3[%c0_3, %c0_4] : memref<50x1xf32, #tpu.memory_space<vmem>>, vector<50x1xf32>
    %4 = vector.broadcast %3 : vector<50x1xf32> to vector<50x256xf32>
    %5 = arith.addf %2, %4 : vector<50x256xf32>
    %cst_5 = arith.constant 0.000000e+00 : f32
    %6 = vector.broadcast %cst_5 : f32 to vector<50x256xf32>
    %7 = arith.maximumf %5, %6 : vector<50x256xf32>
    %c0_6 = arith.constant 0 : index
    %c0_7 = arith.constant 0 : index
    %8 = vector.load %arg4[%c0_6, %c0_7] : memref<2x50xf32, #tpu.memory_space<vmem>>, vector<2x50xf32>
    %cst_8 = arith.constant dense<0.000000e+00> : vector<2x256xf32>
    %9 = tpu.matmul %8, %7, %cst_8 {dimension_numbers = #tpu.dot_dimension_numbers<[1], [0], [0], [1], [0, 0, 1, 1], [], []>, precision = #tpu.contract_precision<fp32>} : vector<2x50xf32>, vector<50x256xf32>, vector<2x256xf32> -> vector<2x256xf32>
    %c0_9 = arith.constant 0 : index
    %c0_10 = arith.constant 0 : index
    %10 = vector.load %arg5[%c0_9, %c0_10] : memref<2x1xf32, #tpu.memory_space<vmem>>, vector<2x1xf32>
    %11 = vector.broadcast %10 : vector<2x1xf32> to vector<2x256xf32>
    %12 = arith.addf %9, %11 : vector<2x256xf32>
    %c0_11 = arith.constant 0 : index
    %c0_12 = arith.constant 0 : index
    %13 = vector.load %arg6[%c0_11, %c0_12] : memref<2x256xf32, #tpu.memory_space<vmem>>, vector<2x256xf32>
    tpu.vector_store %arg6[%c0_11, %c0_12], %12 {strides = array<i32>} : memref<2x256xf32, #tpu.memory_space<vmem>>, vector<2x256xf32>,
    return
  }
  func.func @transform_0(%arg0: i32) -> (i32, i32) {
    %c0_i32 = arith.constant 0 : i32
    %c0_i32_0 = arith.constant 0 : i32
    return %c0_i32, %arg0 : i32, i32
  }
  func.func @transform_1(%arg0: i32) -> (i32, i32) {
    %c0_i32 = arith.constant 0 : i32
    %c0_i32_0 = arith.constant 0 : i32
    %c0_i32_1 = arith.constant 0 : i32
    return %c0_i32, %c0_i32_0 : i32, i32
  }
  func.func @transform_2(%arg0: i32) -> (i32, i32) {
    %c0_i32 = arith.constant 0 : i32
    %c0_i32_0 = arith.constant 0 : i32
    %c0_i32_1 = arith.constant 0 : i32
    return %c0_i32, %c0_i32_0 : i32, i32
  }
  func.func @transform_3(%arg0: i32) -> (i32, i32) {
    %c0_i32 = arith.constant 0 : i32
    %c0_i32_0 = arith.constant 0 : i32
    %c0_i32_1 = arith.constant 0 : i32
    return %c0_i32, %c0_i32_0 : i32, i32
  }
  func.func @transform_4(%arg0: i32) -> (i32, i32) {
    %c0_i32 = arith.constant 0 : i32
    %c0_i32_0 = arith.constant 0 : i32
    %c0_i32_1 = arith.constant 0 : i32
    return %c0_i32, %c0_i32_0 : i32, i32
  }
  func.func @transform_5(%arg0: i32) -> (i32, i32) {
    %c0_i32 = arith.constant 0 : i32
    %c0_i32_0 = arith.constant 0 : i32
    return %c0_i32, %arg0 : i32, i32
  }
}

</mosaic_0001>

<bundles_post_ra>
// kernel: tpu_custom_call.1
= control target key start
LH: loop header
LB: loop body
LE: loop exit
PB: predicated region body
PF: predicated region fallthrough
CT: control target
= control target key end

     0   :  { %10 = vsyncpa [#allocation3], 0  ;;  %s2630_s0 = inlined_call_operand.vmem [shape: f32[2,512], index: 0, kind: input, shape index: {}]   ;;  %s2631_s1 = inlined_call_operand.vmem [shape: f32[50,2], index: 1, kind: input, shape index: {}]   ;;  %s2632_s2 = inlined_call_operand.vmem [shape: f32[50,1], index: 2, kind: input, shape index: {}]   ;;  %s2633_s3 = inlined_call_operand.vmem [shape: f32[2,50], index: 3, kind: input, shape index: {}]   ;;  %s2634_s4 = inlined_call_operand.vmem [shape: f32[2,1], index: 4, kind: input, shape index: {}]   ;;  %s2635_s5 = inlined_call_operand.hbm [shape: f32[2,512], index: 5, kind: output, shape index: {}]  }
   0x1   :  { %12 = vsyncpa [#allocation3 + $0x1], 0  ;;  %s2134_s18 = smov 0   ;;  %s2136_s19 = smov 0  }
   0x2   :  { %s2138_s20 = smov 0   ;;  %s2140_s21 = smov 0  }
   0x3 LB: > { %s2155_s22 = sadd.s32 4294967295, %s2099_s21   ;;  %s1809_s23 = sadd.s32 4294967294, %s2099_s21   ;;  %s2099_s21 = sphi %s2140_s21, %s2641_s21   ;;  %s2095_s20 = sphi %s2138_s20, %s2640_s20   ;;  %s2091_s19 = sphi %s2136_s19, %s2639_s19   ;;  %s2087_s18 = sphi %s2134_s18, %s2638_s18  }
   0x4   : > { %s2159_s24 = sadd.s32 1, %s2099_s21   ;;  %s135_s25 = sadd.s32 1, %s2095_s20 }
   0x5   : > { %s132_s26 = ssub.s32 %s2099_s21, %s2159_s24  ;;  %p145_p0 = scmp.ne.s32.totalorder %s2095_s20, %s2091_s19 }
   0x6   : > { %p133_p1 = scmp.eq.s32.totalorder %s132_s26, 0  ;;  %p146_p2 = scmp.eq.s32.totalorder %s2155_s22, 1 }
   0x7   : > { %p151_p3 = scmp.ne.s32.totalorder %s2091_s19, %s2087_s18  ;;  %p152_p4 = scmp.eq.s32.totalorder %s1809_s23, 1 }
   0x8   : > { %s2170_s27 = scalar_select %p133_p1, %s2095_s20, %s135_s25  }
   0x9   : > { %p2172_p5 = por %p146_p2, %p145_p0  ;;  %p2176_p6 = por %p152_p4, %p151_p3 }
   0xa   : > { %p1812_p7 = scmp.ge.s32.totalorder %s2099_s21, 1  ;;  %p191_p8 = scmp.lt.s32.totalorder %s2099_s21, 3 }
   0xc   : > { %p192_p9 = pnand %p1812_p7, %p191_p8 }
   0xd   : > { %s1814_s30 = sshll.u32 (!%p192_p9), %s2155_s22, 1  ;;  %v227_v0 = vld [vmem:[%s2631_s1] sm:$0xff] (!%p192_p9)  ;;  %vm285_vm0 = vcmask (!%p192_p9), 15360   ;;  %v228_v1 = vld [vmem:[%s2631_s1 + $0x8] sm:$0xff] (!%p192_p9)  ;;  %v2101_v2 = vmov (!%p192_p9), 0.0   ;;  %v229_v6 = vld [vmem:[%s2631_s1 + $0x10] sm:$0xff] (!%p192_p9) }
   0xe   : > { %195 = sbr.rel (%p192_p9) target bundleno = 684 (0x2ac), region = 40  ;;  %p220_p10 = scmp.lt.s32.totalorder (!%p192_p9), %s1814_s30, 3  ;;  %530 = vmatprep.mubr.f32.mxu0 (!%p192_p9), %v2101_v2  ;;  %v287_v3 = vsel (!%p192_p9), %vm285_vm0, %v227_v0, 0  ;;  %378 = vmatprep.mubr.f32.mxu1 (!%p192_p9), %v2101_v2  ;;  %v290_v4 = vsel (!%p192_p9), %vm285_vm0, %v228_v1, 0  ;;  %vm307_vm1 = vcmask (!%p192_p9), 1041408   ;;  %v230_v9 = vld [vmem:[%s2631_s1 + $0x18] sm:$0xff] (!%p192_p9) }
   0xf   : > { %v2193_v5 = vand.u32 (!%p192_p9), 4294901760, %v287_v3  ;;  %v2201_v8 = vand.u32 (!%p192_p9), 4294901760, %v290_v4  ;;  %v293_v11 = vsel (!%p192_p9), %vm285_vm0, %v229_v6, 0  ;;  %v296_v21 = vsel (!%p192_p9), %vm285_vm0, %v230_v9, 0  ;;  %v231_v24 = vld [vmem:[%s2631_s1 + $0x20] sm:$0xff] (!%p192_p9)  ;;  %v232_v35 = vld [vmem:[%s2631_s1 + $0x28] sm:$0xff] (!%p192_p9) }
  0x10   : > { %v2222_v20 = vand.u32 (!%p192_p9), 4294901760, %v293_v11  ;;  %v2243_v30 = vand.u32 (!%p192_p9), 4294901760, %v296_v21  ;;  %v299_v31 = vsel (!%p192_p9), %vm285_vm0, %v231_v24, 0  ;;  %v234_v37 = vld [vmem:[%s2632_s2] sm:$0xff] (!%p192_p9)  ;;  %v236_v38 = vld [vmem:[%s2632_s2 + $0x10] sm:$0xff] (!%p192_p9)  ;;  %v2102_v39 = vmov (!%p192_p9), 0  }
  0x11   : > { %v2199_v7 = vsub.f32 (!%p192_p9), %v287_v3, %v2193_v5  ;;  %v2211_v12 = vsub.f32 (!%p192_p9), %v290_v4, %v2201_v8  ;;  %2035 = vset.pattern.permute.xlu0 (!%p192_p9), %v2102_v39  ;;  %v2269_v42 = vand.u32 (!%p192_p9), 4294901760, %v299_v31  ;;  %2036 = vset.pattern.permute.xlu1 (!%p192_p9), %v2102_v39  ;;  %v302_v45 = vsel (!%p192_p9), %vm285_vm0, %v232_v35, 0  ;;  %v233_v47 = vld [vmem:[%s2631_s1 + $0x30] sm:$0x3] (!%p192_p9)  ;;  %v235_v55 = vld [vmem:[%s2632_s2 + $0x8] sm:$0xff] (!%p192_p9)  ;;  %v237_v56 = vld [vmem:[%s2632_s2 + $0x18] sm:$0xff] (!%p192_p9) }
  0x12   : > { %v2237_v27 = vsub.f32 (!%p192_p9), %v293_v11, %v2222_v20  ;;  %v2267_v41 = vsub.f32 (!%p192_p9), %v296_v21, %v2243_v30  ;;  %243 = vperm.xlu0 (!%p192_p9), %2035, %v234_v37   ;;  %253 = vperm.xlu1 (!%p192_p9), %2036, %v236_v38   ;;  %v2283_v50 = vand.u32 (!%p192_p9), 4294901760, %v302_v45  ;;  %v305_v53 = vsel (!%p192_p9), %vm285_vm0, %v233_v47, 0  ;;  %v238_v62 = vld [vmem:[%s2632_s2 + $0x20] sm:$0xff] (!%p192_p9)  ;;  %v239_v63 = vld [vmem:[%s2632_s2 + $0x28] sm:$0xff] (!%p192_p9)  ;;  %v240_v6 = vld [vmem:[%s2632_s2 + $0x30] sm:$0x3] (!%p192_p9) }
  0x13   : > { %v381_v13 = vand.u32 (!%p192_p9), 4294901760, %v2199_v7  ;;  %v392_v17 = vand.u32 (!%p192_p9), 4294901760, %v2211_v12  ;;  %v2281_v49 = vsub.f32 (!%p192_p9), %v299_v31, %v2269_v42  ;;  %v2304_v58 = vand.u32 (!%p192_p9), 4294901760, %v305_v53  ;;  %v1086_v9 = vld [vmem:[%s2634_s4] sm:$0x3] (!%p192_p9)  ;;  %s216_s10 = sand.u32 (!%p192_p9), 1, %s2091_s19  }
  0x14   : > { %v403_v32 = vand.u32 (!%p192_p9), 4294901760, %v2237_v27  ;;  %v414_v48 = vand.u32 (!%p192_p9), 4294901760, %v2267_v41  ;;  %v2302_v57 = vsub.f32 (!%p192_p9), %v302_v45, %v2283_v50  ;;  %v1085_v24 = vld [vmem:[%s2633_s3] sm:$0x3] (!%p192_p9)  ;;  %vm1092_vm2 = vcmask (!%p192_p9), 408576   ;;  %s1813_s11 = sshll.u32 (!%p192_p9), %s216_s10, 2 }
  0x15   : > { %s2643_s30 = smov (!%p220_p10, %s1814_s30), 3  ;;  %v382_v18 = vsub.f32 %v2199_v7, %v381_v13  ;;  %v393_v26 = vsub.f32 %v2211_v12, %v392_v17  ;;  %v425_v54 = vand.u32 4294901760, %v2281_v49  ;;  %v446_v0 = vsub.f32 %v305_v53, %v2304_v58  ;;  %s218_s13 = scalar_lea.vmem [#allocation2], %s1813_s11 }
  0x16   : > { %s1815_s12 = sshll.u32 %s2643_s30, 1  ;;  %v404_v43 = vsub.f32 %v2237_v27, %v403_v32  ;;  %v415_v52 = vsub.f32 %v2267_v41, %v414_v48  ;;  %248 = vperm.xlu0 %2035, %v235_v55   ;;  %v436_v61 = vand.u32 4294901760, %v2302_v57  ;;  %258 = vperm.xlu1 %2036, %v237_v56   ;;  %s1750_s14 = sshll.u32 %s218_s13, 4  ;;  %s2590_s14 = int_to_ptr.vmem [resolvable:$true] %s1750_s14 }
  0x17   : > { %s223_s15 = scalar_lea.vmem %s2630_s0, %s1815_s12  ;;  %v383_v25 = vand.u32 4294901760, %v382_v18  ;;  %v394_v36 = vand.u32 4294901760, %v393_v26  ;;  %v426_v60 = vsub.f32 %v2281_v49, %v425_v54  ;;  %v447_v4 = vand.u32 4294901760, %v446_v0  ;;  %s1823_s12 = sshll.u32 %s2155_s22, 6 }
  0x18   : > { %v1816_v10 = vld.sshfl [vmem:[%s223_s15] sm:$0x33 pattern:$0x76325410]  ;;  %v405_v51 = vand.u32 4294901760, %v404_v43  ;;  %v416_v59 = vand.u32 4294901760, %v415_v52  ;;  %v437_v3 = vsub.f32 %v2302_v57, %v436_v61  ;;  %s2588_s17 = scalar_lea.hbm %s2635_s5, %s1823_s12 }
  0x19   : > { %v284_v14 = vcombine.high %v1816_v10, %v1816_v10  ;;  %v308_v15 = vsel %vm307_vm1, %v1816_v10, 0  ;;  %v427_v1 = vand.u32 4294901760, %v426_v60  ;;  %v448_v11 = vsub.f32 %v446_v0, %v447_v4  ;;  %s1736_s23 = scalar_lea.sflag [#allocation3], %s216_s10  ;;  %s2037_s25 = scalar_lea.vmem %s2590_s14, 64 }
  0x1a   : > { %v2215_v16 = vand.u32 4294901760, %v308_v15  ;;  %263 = vperm.xlu0 %2035, %v238_v62   ;;  %268 = vperm.xlu1 %2036, %v239_v63   ;;  %v438_v10 = vand.u32 4294901760, %v437_v3  ;;  %p2038_p11 = scmp.ne.s32.totalorder %s2590_s14, %s2037_s25  ;;  %s2103_s22 = smov [#allocation2]  }
  0x1b   : > { %v310_v19 = vsel %vm307_vm1, %v284_v14, 0  ;;  %v449_v14 = vand.u32 4294901760, %v448_v11  ;;  %s2041_s26 = sshll.u32 %s2103_s22, 4  ;;  %s2042_s26 = int_to_ptr.vmem [resolvable:$false] %s2041_s26 }
  0x1c   : > { %v2225_v22 = vand.u32 4294901760, %v310_v19  ;;  %v2228_v23 = vsub.f32 %v308_v15, %v2215_v16  ;;  %p2039_p12 = pnand %p2038_p11, %p2172_p5  ;;  %s2043_s30 = scalar_lea.vmem %s2042_s26, 128 }
  0x1d   : > { %p2044_p0 = scmp.lt.s32.totalorder %s2590_s14, %s2042_s26  ;;  %p2045_p1 = scmp.lt.s32.totalorder %s2043_s30, %s2037_s25 }
  0x1e   : > { %v2240_v28 = vsub.f32 %v310_v19, %v2225_v22  ;;  %v464_v29 = vand.u32 4294901760, %v2228_v23  ;;  %313 = vmatprep.subr.mxu1 %v2225_v22  ;;  %273 = vperm.xlu0 %2035, %v240_v6   ;;  %p2040_p13 = pneg %p2039_p12 }
  0x1f   : > { %315 = vmatpush1.msra.mxu1 %v2215_v16  ;;  %1089 = vperm.xlu1 %2036, %v1086_v9   ;;  %p2046_p2 = por %p2045_p1, %p2044_p0 }
  0x20   : > { %v458_v33 = vand.u32 4294901760, %v2240_v28  ;;  %v465_v34 = vsub.f32 %v2228_v23, %v464_v29  ;;  %384 = vmatmul.mubr.f32.vlgmr.msra.gmra.mrb[0].mxu1 %v383_v25  ;;  %v1094_v25 = vsel %vm1092_vm2, %v1085_v24, 0 }
  0x21   : > { %389 = vmatprep.mubr.f32.mxu1 %v2101_v2  ;;  %p2047_p3 = pnand %p2046_p2, %p2040_p13 }
  0x22   : > { %v459_v40 = vsub.f32 %v2240_v28, %v458_v33  ;;  %v466_v44 = vand.u32 4294901760, %v465_v34 }
  0x24   : > { %v460_v46 = vand.u32 4294901760, %v459_v40  ;;  %395 = vmatmul.mubr.f32.gmra.mrb[2].mxu1 %v394_v36 }
  0x25   : > { %400 = vmatprep.mubr.f32.mxu1 %v2101_v2 }
  0x26   : > { %461 = vmatprep.subr.mxu0 %v460_v46  ;;  %1896 = vmatprep.subr.mxu1 %v460_v46 }
  0x27   : > { %467 = vmatpush1.msra.mxu0 %v466_v44  ;;  %1897 = vmatpush1.msra.mxu1 %v466_v44 }
  0x28   : > { %532 = vmatmul.mubr.f32.vlgmr.msra.gmra.mrb[0].mxu0 %v2193_v5  ;;  %582 = vmatprep.subr.mxu0 %v2240_v28 }
  0x29   : > { %585 = vmatpush1.msra.mxu0 %v2228_v23  ;;  %537 = vmatprep.mubr.f32.mxu0 %v2101_v2 }
  0x2a   : > { %706 = vmatprep.subr.mxu0 %v2225_v22  ;;  %406 = vmatmul.mubr.f32.gmra.mrb[4].mxu1 %v405_v51 }
  0x2b   : > { %411 = vmatprep.mubr.f32.mxu1 %v2101_v2 }
  0x2c   : > { %539 = vmatmul.mubr.f32.gmra.mrb[2].mxu0 %v2201_v8 }
  0x2d   : > { %544 = vmatprep.mubr.f32.mxu0 %v2101_v2 }
  0x2e   : > { %417 = vmatmul.mubr.f32.gmra.mrb[6].mxu1 %v416_v59 }
  0x2f   : > { %422 = vmatprep.mubr.f32.mxu1 %v2101_v2 }
  0x30   : > { %546 = vmatmul.mubr.f32.gmra.mrb[4].mxu0 %v2222_v20 }
  0x31   : > { %648 = vmatprep.mubr.f32.mxu0 %v2101_v2 }
  0x32   : > { %428 = vmatmul.mubr.f32.gmra.mrb[8].mxu1 %v427_v1 }
  0x33   : > { %433 = vmatprep.mubr.f32.mxu1 %v2101_v2 }
  0x34   : > { %651 = vmatmul.mubr.f32.vlgmr.msra.gmra.mrb[0].mxu0 %v2199_v7 }
  0x35   : > { %708 = vmatpush1.msra.mxu0 %v2215_v16  ;;  %656 = vmatprep.mubr.f32.mxu0 %v2101_v2 }
  0x36   : > { %838 = vmatprep.subr.mxu0 %v458_v33  ;;  %439 = vmatmul.mubr.f32.gmra.mrb[10].mxu1 %v438_v10 }
  0x37   : > { %444 = vmatprep.mubr.f32.mxu1 %v2101_v2 }
  0x38   : > { %659 = vmatmul.mubr.f32.gmra.mrb[2].mxu0 %v2211_v12 }
  0x39   : > { %664 = vmatprep.mubr.f32.mxu0 %v2101_v2 }
  0x3a   : > { %450 = vmatmul.mubr.f32.gmra.mrb[12].mxu1 %v449_v14 }
  0x3b   : > { %551 = vmatprep.mubr.f32.mxu1 %v2101_v2 }
  0x3c   : > { %667 = vmatmul.mubr.f32.gmra.mrb[4].mxu0 %v2237_v27  ;;  %v2412_v27 = vand.u32 4294901760, %v1094_v25 }
  0x3d   : > { %672 = vmatprep.mubr.f32.mxu0 %v2101_v2 }
  0x3e   : > { %553 = vmatmul.mubr.f32.vlgmr.msra.gmra.mrb[6].mxu1 %v2243_v30 }
  0x3f   : > { %558 = vmatprep.mubr.f32.mxu1 %v2101_v2 }
  0x40   : > { %675 = vmatmul.mubr.f32.gmra.mrb[6].mxu0 %v2267_v41 }
  0x41   : > { %680 = vmatprep.mubr.f32.mxu0 %v2101_v2 }
  0x42   : > { %560 = vmatmul.mubr.f32.gmra.mrb[8].mxu1 %v2269_v42 }
  0x43   : > { %565 = vmatprep.mubr.f32.mxu1 %v2101_v2 }
  0x44   : > { %683 = vmatmul.mubr.f32.gmra.mrb[8].mxu0 %v2281_v49 }
  0x45   : > { %688 = vmatprep.mubr.f32.mxu0 %v2101_v2 }
  0x46   : > { %567 = vmatmul.mubr.f32.gmra.mrb[10].mxu1 %v2283_v50 }
  0x47   : > { %572 = vmatprep.mubr.f32.mxu1 %v2101_v2 }
  0x48   : > { %691 = vmatmul.mubr.f32.gmra.mrb[10].mxu0 %v2302_v57 }
  0x49   : > { %696 = vmatprep.mubr.f32.mxu0 %v2101_v2 }
  0x4a   : > { %574 = vmatmul.mubr.f32.gmra.mrb[12].mxu1 %v2304_v58 }
  0x4b   : > { %1180 = vmatprep.mubr.f32.mxu1 %v2101_v2 }
  0x4c   : > { %699 = vmatmul.mubr.f32.gmra.mrb[12].mxu0 %v446_v0 }
  0x4d   : > { %771 = vmatprep.mubr.f32.mxu0 %v2101_v2 }
  0x50   : > { %775 = vmatmul.mubr.f32.vlgmr.msra.gmra.mrb[0].mxu0 %v381_v13 }
  0x51   : > { %842 = vmatpush1.msra.mxu0 %v464_v29  ;;  %780 = vmatprep.mubr.f32.mxu0 %v2101_v2  ;;  %v2415_v29 = vsub.f32 %v1094_v25, %v2412_v27 }
  0x52   : > { %956 = vmatprep.subr.mxu0 %v2225_v22 }
  0x53   : > { %v1183_v37 = vand.u32 4294901760, %v2415_v29 }
  0x54   : > { %784 = vmatmul.mubr.f32.gmra.mrb[2].mxu0 %v392_v17 }
  0x55   : > { %789 = vmatprep.mubr.f32.mxu0 %v2101_v2 }
  0x58   : > { %793 = vmatmul.mubr.f32.gmra.mrb[4].mxu0 %v403_v32 }
  0x59   : > { %798 = vmatprep.mubr.f32.mxu0 %v2101_v2 }
  0x5c   : > { %802 = vmatmul.mubr.f32.gmra.mrb[6].mxu0 %v414_v48 }
  0x5d   : > { %807 = vmatprep.mubr.f32.mxu0 %v2101_v2 }
  0x60   : > { %811 = vmatmul.mubr.f32.gmra.mrb[8].mxu0 %v425_v54 }
  0x61   : > { %816 = vmatprep.mubr.f32.mxu0 %v2101_v2 }
  0x64   : > { %820 = vmatmul.mubr.f32.gmra.mrb[10].mxu0 %v436_v61 }
  0x65   : > { %825 = vmatprep.mubr.f32.mxu0 %v2101_v2 }
  0x68   : > { %829 = vmatmul.mubr.f32.gmra.mrb[12].mxu0 %v447_v4 }
  0x69   : > { %905 = vmatprep.mubr.f32.mxu0 %v2101_v2 }
  0x6c   : > { %907 = vmatmul.mubr.f32.vlgmr.msra.gmra.mrb[0].mxu0 %v2193_v5 }
  0x6d   : > { %958 = vmatpush1.msra.mxu0 %v2215_v16  ;;  %912 = vmatprep.mubr.f32.mxu0 %v2101_v2 }
  0x70   : > { %914 = vmatmul.mubr.f32.gmra.mrb[2].mxu0 %v2201_v8 }
  0x71   : > { %919 = vmatprep.mubr.f32.mxu0 %v2101_v2 }
  0x74   : > { %921 = vmatmul.mubr.f32.gmra.mrb[4].mxu0 %v2222_v20 }
  0x75   : > { %926 = vmatprep.mubr.f32.mxu0 %v2101_v2 }
  0x78   : > { %928 = vmatmul.mubr.f32.gmra.mrb[6].mxu0 %v2243_v30 }
  0x79   : > { %933 = vmatprep.mubr.f32.mxu0 %v2101_v2 }
  0x7c   : > { %935 = vmatmul.mubr.f32.gmra.mrb[8].mxu0 %v2269_v42 }
  0x7d   : > { %940 = vmatprep.mubr.f32.mxu0 %v2101_v2 }
  0x80   : > { %942 = vmatmul.mubr.f32.gmra.mrb[10].mxu0 %v2283_v50 }
  0x81   : > { %947 = vmatprep.mubr.f32.mxu0 %v2101_v2 }
  0x84   : > { %949 = vmatmul.mubr.f32.gmra.mrb[12].mxu0 %v2304_v58 }
  0x85   : > { %1021 = vmatprep.mubr.f32.mxu0 %v2101_v2 }
  0x88   : > { %1023 = vmatmul.mubr.f32.vlgmr.msra.gmra.mrb[0].mxu0 %v2193_v5 }
  0x89   : > { %1028 = vmatprep.mubr.f32.mxu0 %v2101_v2 }
  0x8c   : > { %1030 = vmatmul.mubr.f32.gmra.mrb[2].mxu0 %v2201_v8 }
  0x8d   : > { %1035 = vmatprep.mubr.f32.mxu0 %v2101_v2 }
  0x90   : > { %1037 = vmatmul.mubr.f32.gmra.mrb[4].mxu0 %v2222_v20 }
  0x91   : > { %1042 = vmatprep.mubr.f32.mxu0 %v2101_v2  ;;  %v244_v26 = vpop.permute.xlu0 %243  ;;  %v254_v28 = vpop.permute.xlu1 %253 }
  0x94   : > { %1044 = vmatmul.mubr.f32.gmra.mrb[6].mxu0 %v2243_v30 }
  0x95   : > { %1049 = vmatprep.mubr.f32.mxu0 %v2101_v2  ;;  %v249_v31 = vpop.permute.xlu0 %248  ;;  %v259_v34 = vpop.permute.xlu1 %258 }
  0x98   : > { %1051 = vmatmul.mubr.f32.gmra.mrb[8].mxu0 %v2269_v42 }
  0x99   : > { %1056 = vmatprep.mubr.f32.mxu0 %v2101_v2  ;;  %v264_v40 = vpop.permute.xlu0 %263  ;;  %v269_v47 = vpop.permute.xlu1 %268 }
  0x9c   : > { %1058 = vmatmul.mubr.f32.gmra.mrb[10].mxu0 %v2283_v50  ;;  %v2421_v50 = vsub.f32 %v2415_v29, %v1183_v37 }
  0x9d   : > { %1063 = vmatprep.mubr.f32.mxu0 %v2101_v2  ;;  %v274_v59 = vpop.permute.xlu0 %273 }
  0xa0   : > { %1065 = vmatmul.mubr.f32.gmra.mrb[12].mxu0 %v2304_v58 }
  0xf3   : > { %v385_v5 = vpop.f32.mrb[0].mxu1 }
  0xf4   : > { %v387_v7 = vpop.f32.mrb[1].mxu1  ;;  %v386_v30 = vadd.f32 %v385_v5, %v244_v26 }
  0xf5   : > { %v388_v32 = vadd.f32 %v387_v7, %v244_v26 }
  0xf7   : > { %v396_v8 = vpop.f32.mrb[2].mxu1 }
  0xf8   : > { %v398_v12 = vpop.f32.mrb[3].mxu1  ;;  %v397_v39 = vadd.f32 %v396_v8, %v249_v31 }
  0xf9   : > { %v399_v42 = vadd.f32 %v398_v12, %v249_v31 }
  0xfd   : > { %v407_v13 = vpop.f32.mrb[4].mxu1 }
  0xfe   : > { %v409_v15 = vpop.f32.mrb[5].mxu1  ;;  %v408_v45 = vadd.f32 %v407_v13, %v254_v28 }
  0xff   : > { %v410_v51 = vadd.f32 %v409_v15, %v254_v28 }
 0x111   : > { %v554_v16 = vpop.f32.mrb[6].mxu1 }
 0x112   : > { %v556_v17 = vpop.f32.mrb[7].mxu1  ;;  %v1910_v52 = vadd.f32 %v554_v16, %v259_v34 }
 0x113   : > { %v1912_v55 = vadd.f32 %v556_v17, %v259_v34 }
 0x115   : > { %v561_v18 = vpop.f32.mrb[8].mxu1 }
 0x116   : > { %v563_v19 = vpop.f32.mrb[9].mxu1  ;;  %v1914_v56 = vadd.f32 %v561_v18, %v264_v40 }
 0x117   : > { %v1916_v60 = vadd.f32 %v563_v19, %v264_v40 }
 0x119   : > { %v568_v20 = vpop.f32.mrb[10].mxu1 }
 0x11a   : > { %v570_v21 = vpop.f32.mrb[11].mxu1  ;;  %v1918_v62 = vadd.f32 %v568_v20, %v269_v47 }
 0x11b   : > { %v1920_v3 = vadd.f32 %v570_v21, %v269_v47 }
 0x11d   : > { %v575_v22 = vpop.f32.mrb[12].mxu1 }
 0x11e   : > { %v577_v23 = vpop.f32.mrb[13].mxu1  ;;  %v2429_v14 = vadd.f32 %v575_v22, %v274_v59 }
 0x11f   : > { %v2440_v16 = vadd.f32 %v577_v23, %v274_v59 }
 0x15b   : > { %v1024_v33 = vpop.f32.mrb[0].mxu0 }
 0x15c   : > { %v1899_v35 = vadd.f32 %v1024_v33, %v386_v30  ;;  %v1026_v36 = vpop.f32.mrb[1].mxu0 }
 0x15d   : > { %v1901_v38 = vadd.f32 %v1026_v36, %v388_v32 }
 0x15e   : > { %v1071_v41 = vmax.f32 %v1899_v35, 0.0 }
 0x15f   : > { %v1072_v43 = vmax.f32 %v1901_v38, 0.0  ;;  %v1031_v44 = vpop.f32.mrb[2].mxu0 }
 0x160   : > { %v1104_v46 = vand.u32 4294901760, %v1071_v41  ;;  %v1903_v48 = vadd.f32 %v1031_v44, %v397_v39  ;;  %v1033_v49 = vpop.f32.mrb[3].mxu0 }
 0x161   : > { %v1102_v53 = vand.u32 4294901760, %v1072_v43  ;;  %v1905_v54 = vadd.f32 %v1033_v49, %v399_v42 }
 0x162   : > { %v2423_v57 = vsub.f32 %v1071_v41, %v1104_v46  ;;  %v1073_v58 = vmax.f32 %v1903_v48, 0.0 }
 0x163   : > { %v2425_v61 = vsub.f32 %v1072_v43, %v1102_v53  ;;  %v1074_v63 = vmax.f32 %v1905_v54, 0.0  ;;  %v1038_v0 = vpop.f32.mrb[4].mxu0 }
 0x164   : > { %v1200_v1 = vand.u32 4294901760, %v2423_v57  ;;  %v1108_v4 = vand.u32 4294901760, %v1073_v58  ;;  %v1907_v6 = vadd.f32 %v1038_v0, %v408_v45  ;;  %v1040_v9 = vpop.f32.mrb[5].mxu0 }
 0x165   : > { %v1194_v10 = vand.u32 4294901760, %v2425_v61  ;;  %v1106_v11 = vand.u32 4294901760, %v1074_v63  ;;  %v1909_v5 = vadd.f32 %v1040_v9, %v410_v51 }
 0x166   : > { %v1201_v7 = vsub.f32 %v2423_v57, %v1200_v1  ;;  %v2434_v8 = vpack.c.bf16 %v1108_v4, %v1104_v46  ;;  %v2436_v12 = vsub.f32 %v1073_v58, %v1108_v4  ;;  %v1075_v13 = vmax.f32 %v1907_v6, 0.0 }
 0x167   : > { %v2438_v15 = vsub.f32 %v1074_v63, %v1106_v11  ;;  %v1076_v17 = vmax.f32 %v1909_v5, 0.0  ;;  %v1045_v18 = vpop.f32.mrb[6].mxu0  ;;  %v2442_v19 = vpack.c.bf16 %v1106_v11, %v1102_v53  ;;  %v1195_v25 = vsub.f32 %v2425_v61, %v1194_v10 }
 0x168   : > { %v1212_v20 = vand.u32 4294901760, %v2436_v12  ;;  %v1112_v21 = vand.u32 4294901760, %v1075_v13  ;;  %v1911_v22 = vadd.f32 %v1910_v52, %v1045_v18  ;;  %v1047_v24 = vpop.f32.mrb[7].mxu0  ;;  %v1202_v26 = vand.u32 4294901760, %v1201_v7 }
 0x169   : > { %v1206_v28 = vand.u32 4294901760, %v2438_v15  ;;  %v1110_v30 = vand.u32 4294901760, %v1076_v17  ;;  %v1913_v31 = vadd.f32 %v1912_v55, %v1047_v24  ;;  %1825 = vmatprep.subr.bf16.mxu1 %v2442_v19  ;;  %v1848_v34 = vpack.c.bf16 %v2438_v15, %v2425_v61 }
 0x16a   : > { %v1213_v23 = vsub.f32 %v2436_v12, %v1212_v20  ;;  %v2453_v32 = vsub.f32 %v1075_v13, %v1112_v21  ;;  %v1077_v33 = vmax.f32 %v1911_v22, 0.0  ;;  %1827 = vmatpush1.bf16.msra.mxu1 %v2434_v8  ;;  %v1850_v40 = vpack.c.bf16 %v2436_v12, %v2423_v57 }
 0x16b   : > { %v2458_v35 = vsub.f32 %v1076_v17, %v1110_v30  ;;  %v1078_v36 = vmax.f32 %v1913_v31, 0.0  ;;  %v1052_v38 = vpop.f32.mrb[8].mxu0  ;;  %v1207_v39 = vsub.f32 %v2438_v15, %v1206_v28  ;;  %v1196_v45 = vand.u32 4294901760, %v1195_v25 }
 0x16c   : > { %v1224_v41 = vand.u32 4294901760, %v2453_v32  ;;  %v1116_v42 = vand.u32 4294901760, %v1077_v33  ;;  %v1915_v43 = vadd.f32 %v1914_v56, %v1052_v38  ;;  %v1054_v44 = vpop.f32.mrb[9].mxu0  ;;  %v1214_v46 = vand.u32 4294901760, %v1213_v23 }
 0x16d   : > { %v1114_v47 = vand.u32 4294901760, %v1078_v36  ;;  %v1917_v48 = vadd.f32 %v1916_v60, %v1054_v44  ;;  %v1208_v49 = vand.u32 4294901760, %v1207_v39  ;;  %v1218_v51 = vand.u32 4294901760, %v2458_v35 }
 0x16e   : > { %v2467_v52 = vpack.c.bf16 %v1116_v42, %v1112_v21  ;;  %v2469_v53 = vsub.f32 %v1077_v33, %v1116_v42  ;;  %v1079_v54 = vmax.f32 %v1915_v43, 0.0  ;;  %v1225_v60 = vsub.f32 %v2453_v32, %v1224_v41 }
 0x16f   : > { %v2471_v55 = vsub.f32 %v1078_v36, %v1114_v47  ;;  %v1080_v58 = vmax.f32 %v1917_v48, 0.0  ;;  %v1059_v59 = vpop.f32.mrb[10].mxu0  ;;  %v2473_v63 = vpack.c.bf16 %v1114_v47, %v1110_v30  ;;  %v2475_v56 = vpack.c.bf16 %v1208_v49, %v1196_v45 }
 0x170   : > { %v1236_v0 = vand.u32 4294901760, %v2469_v53  ;;  %v1120_v4 = vand.u32 4294901760, %v1079_v54  ;;  %v1919_v6 = vadd.f32 %v1918_v62, %v1059_v59  ;;  %v1061_v9 = vpop.f32.mrb[11].mxu0  ;;  %v2483_v13 = vpack.c.bf16 %v1214_v46, %v1202_v26 }
 0x171   : > { %v1230_v11 = vand.u32 4294901760, %v2471_v55  ;;  %v1118_v5 = vand.u32 4294901760, %v1080_v58  ;;  %v1921_v7 = vadd.f32 %v1920_v3, %v1061_v9  ;;  %1829 = vmatprep.subr.bf16.mxu1 %v2473_v63  ;;  %v1219_v62 = vsub.f32 %v2458_v35, %v1218_v51 }
 0x172   : > { %v1237_v17 = vsub.f32 %v2469_v53, %v1236_v0  ;;  %v2488_v18 = vsub.f32 %v1079_v54, %v1120_v4  ;;  %v1081_v21 = vmax.f32 %v1919_v6, 0.0  ;;  %1831 = vmatpush1.bf16.msra.mxu1 %v2467_v52  ;;  %v1852_v26 = vpack.c.bf16 %v2471_v55, %v2458_v35 }
 0x173   : > { %v2494_v22 = vsub.f32 %v1080_v58, %v1118_v5  ;;  %v1082_v3 = vmax.f32 %v1921_v7, 0.0  ;;  %v1066_v24 = vpop.f32.mrb[12].mxu0  ;;  %v1231_v25 = vsub.f32 %v2471_v55, %v1230_v11  ;;  %v1226_v38 = vand.u32 4294901760, %v1225_v60 }
 0x174   : > { %v1238_v30 = vand.u32 4294901760, %v1237_v17  ;;  %v1248_v31 = vand.u32 4294901760, %v2488_v18  ;;  %v1124_v23 = vand.u32 4294901760, %v1081_v21  ;;  %v1923_v33 = vadd.f32 %v2429_v14, %v1066_v24  ;;  %v1068_v36 = vpop.f32.mrb[13].mxu0 }
 0x175   : > { %v1242_v39 = vand.u32 4294901760, %v2494_v22  ;;  %v1122_v42 = vand.u32 4294901760, %v1082_v3  ;;  %v1925_v43 = vadd.f32 %v2440_v16, %v1068_v36  ;;  %v1220_v47 = vand.u32 4294901760, %v1219_v62 }
 0x176   : > { %v2503_v44 = vpack.c.bf16 %v1124_v23, %v1120_v4  ;;  %v2505_v45 = vsub.f32 %v1081_v21, %v1124_v23  ;;  %v1083_v46 = vmax.f32 %v1923_v33, 0.0  ;;  %v1232_v58 = vand.u32 4294901760, %v1231_v25 }
 0x177   : > { %v1253_v48 = vsub.f32 %v1082_v3, %v1122_v42  ;;  %v1084_v49 = vmax.f32 %v1925_v43, 0.0  ;;  %v2507_v54 = vpack.c.bf16 %v1122_v42, %v1118_v5  ;;  %v1249_v14 = vsub.f32 %v2488_v18, %v1248_v31 }
 0x178   : > { %v1260_v59 = vand.u32 4294901760, %v2505_v45  ;;  %v1097_v60 = vsel %vm307_vm1, %v1083_v46, 0  ;;  %v1842_v6 = vpack.c.bf16 %v1238_v30, %v1226_v38  ;;  %v1840_v7 = vpack.c.bf16 %v1232_v58, %v1220_v47 }
 0x179   : > { %v1254_v9 = vand.u32 4294901760, %v1253_v48  ;;  %v2512_v16 = vand.u32 4294901760, %v1097_v60  ;;  %v1100_v4 = vsel %vm307_vm1, %v1084_v49, 0  ;;  %1833 = vmatprep.subr.bf16.mxu1 %v2507_v54  ;;  %v1243_v21 = vsub.f32 %v2494_v22, %v1242_v39 }
 0x17a   : > { %v1261_v17 = vsub.f32 %v2505_v45, %v1260_v59  ;;  %v2517_v5 = vand.u32 4294901760, %v1100_v4  ;;  %1835 = vmatpush1.bf16.msra.mxu1 %v2503_v44  ;;  %v1854_v62 = vpack.c.bf16 %v2469_v53, %v2453_v32  ;;  %v1185_v3 = vand.u32 4294901760, %v2421_v50 }
 0x17b   : > { %v1255_v24 = vsub.f32 %v1253_v48, %v1254_v9  ;;  %v1856_v25 = vpack.c.bf16 %v1253_v48, %v2494_v22  ;;  %v1858_v30 = vpack.c.bf16 %v2505_v45, %v2488_v18  ;;  %v1250_v23 = vand.u32 4294901760, %v1249_v14 }
 0x17c   : > { %v1262_v33 = vand.u32 4294901760, %v1261_v17  ;;  %v1265_v36 = vsub.f32 %v1100_v4, %v2517_v5  ;;  %1127 = vmatprep.subr.mxu1 %v2517_v5  ;;  %v1872_v38 = vpack.c.bf16 %v1206_v28, %v1194_v10  ;;  %v1244_v42 = vand.u32 4294901760, %v1243_v21 }
 0x17d   : > { %v1256_v43 = vand.u32 4294901760, %v1255_v24  ;;  %v1874_v50 = vpack.c.bf16 %v1212_v20, %v1200_v1  ;;  %v1876_v18 = vpack.c.bf16 %v1230_v11, %v1218_v51  ;;  %v1271_v22 = vsub.f32 %v1097_v60, %v2512_v16 }
 0x17e   : > { %1129 = vmatpush1.msra.mxu1 %v2512_v16  ;;  %v1846_v45 = vpack.c.bf16 %v1262_v33, %v1250_v23  ;;  %v1878_v10 = vpack.c.bf16 %v1236_v0, %v1224_v41  ;;  %v1880_v28 = vpack.c.bf16 %v1254_v9, %v1242_v39  ;;  %v1266_v47 = vand.u32 4294901760, %v1265_v36 }
 0x17f   : > { %1837 = vmatprep.subr.bf16.mxu1 %v2475_v56  ;;  %1186 = vmatmul.mubr.f32.vlgmr.msra.gmra.mrb[14].mxu1 %v1185_v3  ;;  %v1844_v46 = vpack.c.bf16 %v1256_v43, %v1244_v42  ;;  %v1882_v1 = vpack.c.bf16 %v1260_v59, %v1248_v31  ;;  %v1272_v20 = vand.u32 4294901760, %v1271_v22 }
 0x180   : > { %1839 = vmatpush1.bf16.msra.mxu1 %v2483_v13  ;;  %1326 = vmatprep.mubr.f32.mxu1 %v2101_v2  ;;  %v1267_v51 = vsub.f32 %v1265_v36, %v1266_v47 }
 0x181   : > { %1841 = vmatprep.subr.bf16.mxu1 %v1840_v7  ;;  %v1273_v32 = vsub.f32 %v1271_v22, %v1272_v20 }
 0x182   : > { %v1268_v11 = vand.u32 4294901760, %v1267_v51 }
 0x183   : > { %v1274_v41 = vand.u32 4294901760, %v1273_v32 }
 0x184   : > { %1843 = vmatpush1.bf16.msra.mxu1 %v1842_v6 }
 0x185   : > { %1845 = vmatprep.subr.bf16.mxu1 %v1844_v46 }
 0x188   : > { %1847 = vmatpush1.bf16.msra.mxu1 %v1846_v45 }
 0x189   : > { %1269 = vmatprep.subr.mxu1 %v1268_v11 }
 0x18c   : > { %1275 = vmatpush1.msra.mxu1 %v1274_v41 }
 0x18d   : > { %1849 = vmatprep.subr.bf16.mxu1 %v1848_v34  ;;  %1328 = vmatmul.mubr.f32.vlgmr.msra.gmra.mrb[14].mxu1 %v2412_v27 }
 0x18e   : > { %1851 = vmatpush1.bf16.msra.mxu1 %v1850_v40  ;;  %1426 = vmatprep.mubr.f32.mxu1 %v2101_v2 }
 0x18f   : > { %1853 = vmatprep.subr.bf16.mxu1 %v1852_v26 }
 0x192   : > { %1855 = vmatpush1.bf16.msra.mxu1 %v1854_v62 }
 0x193   : > { %1857 = vmatprep.subr.bf16.mxu1 %v1856_v25 }
 0x196   : > { %1859 = vmatpush1.bf16.msra.mxu1 %v1858_v30 }
 0x197   : > { %1372 = vmatprep.subr.mxu1 %v1265_v36 }
 0x19a   : > { %1375 = vmatpush1.msra.mxu1 %v1271_v22 }
 0x19b   : > { %1861 = vmatprep.subr.bf16.mxu1 %v2442_v19  ;;  %1429 = vmatmul.mubr.f32.vlgmr.msra.gmra.mrb[14].mxu1 %v2415_v29  ;;  %v1090_v29 = vpop.permute.xlu1 %1089 }
 0x19c   : > { %1863 = vmatpush1.bf16.msra.mxu1 %v2434_v8  ;;  %1513 = vmatprep.mubr.f32.mxu1 %v2101_v2 }
 0x19d   : > { %1865 = vmatprep.subr.bf16.mxu1 %v2473_v63 }
 0x1a0   : > { %1867 = vmatpush1.bf16.msra.mxu1 %v2467_v52 }
 0x1a1   : > { %1869 = vmatprep.subr.bf16.mxu1 %v2507_v54 }
 0x1a4   : > { %1871 = vmatpush1.bf16.msra.mxu1 %v2503_v44 }
 0x1a5   : > { %1460 = vmatprep.subr.mxu1 %v2517_v5 }
 0x1a8   : > { %1462 = vmatpush1.msra.mxu1 %v2512_v16 }
 0x1a9   : > { %1873 = vmatprep.subr.bf16.mxu1 %v1872_v38  ;;  %1517 = vmatmul.mubr.f32.vlgmr.msra.gmra.mrb[14].mxu1 %v1183_v37 }
 0x1aa   : > { %1875 = vmatpush1.bf16.msra.mxu1 %v1874_v50  ;;  %1629 = vmatprep.mubr.f32.mxu1 %v2101_v2 }
 0x1ab   : > { %1877 = vmatprep.subr.bf16.mxu1 %v1876_v18 }
 0x1ae   : > { %1879 = vmatpush1.bf16.msra.mxu1 %v1878_v10 }
 0x1af   : > { %1881 = vmatprep.subr.bf16.mxu1 %v1880_v28 }
 0x1b2   : > { %1883 = vmatpush1.bf16.msra.mxu1 %v1882_v1 }
 0x1b3   : > { %1574 = vmatprep.subr.mxu1 %v1266_v47 }
 0x1b6   : > { %1578 = vmatpush1.msra.mxu1 %v1272_v20 }
 0x1b7   : > { %1885 = vmatprep.subr.bf16.mxu1 %v2442_v19  ;;  %1631 = vmatmul.mubr.f32.vlgmr.msra.gmra.mrb[14].mxu1 %v2412_v27 }
 0x1b8   : > { %1887 = vmatpush1.bf16.msra.mxu1 %v2434_v8  ;;  %1715 = vmatprep.mubr.f32.mxu1 %v2101_v2 }
 0x1b9   : > { %1889 = vmatprep.subr.bf16.mxu1 %v2473_v63 }
 0x1bc   : > { %1891 = vmatpush1.bf16.msra.mxu1 %v2467_v52 }
 0x1bd   : > { %1893 = vmatprep.subr.bf16.mxu1 %v2507_v54 }
 0x1c0   : > { %1895 = vmatpush1.bf16.msra.mxu1 %v2503_v44 }
 0x1c1   : > { %1662 = vmatprep.subr.mxu1 %v2517_v5 }
 0x1c4   : > { %1664 = vmatpush1.msra.mxu1 %v2512_v16 }
 0x1c5   : > { %1717 = vmatmul.mubr.f32.vlgmr.msra.gmra.mrb[14].mxu1 %v2412_v27 }
 0x298   : > { %v1718_v37 = vpop.f32.mrb[14].mxu1 }
 0x299   : > { %v1926_v2 = vadd.f32 %v1718_v37, %v1090_v29  ;;  %v1720_v57 = vpop.f32.mrb[15].mxu1 }
 0x29a   : > { %v1927_v61 = vadd.f32 %v1720_v57, %v1090_v29 }
 0x29c   : > { %v1725_v8 = vcombine.low %v1926_v2, %v1927_v61 }
 0x29e   : > { %1817 = vst.sshfl [vmem:[%s218_s13] sm:$0x33 pattern:$0x76325410] %v1725_v8 }
 0x29f   : > { %2050 = shalt.err (!%p2047_p3)
}
 0x2a0   : > { %s2051_s6 = scalar_lea.hbm %s2588_s17, 64  ;;  %s2055_s9 = scalar_lea.hbm %s2635_s5, 128 }
 0x2a1   : > { %p2052_p4 = scmp.ne.s32.totalorder %s2588_s17, %s2051_s6  ;;  %p2056_p9 = scmp.lt.u32.totalorder %s2588_s17, %s2635_s5 }
 0x2a2   : > { %p2057_p10 = scmp.lt.u32.totalorder %s2055_s9, %s2051_s6  ;;  %p2059_p12 = scmp.lt.u32.totalorder %s2051_s6, %s2588_s17 }
 0x2a3   : > { %p2053_p7 = pnand %p2052_p4, %p2172_p5 }
 0x2a4   : > { %p2058_p11 = por %p2057_p10, %p2056_p9 }
 0x2a5   : > { %p2054_p8 = pneg %p2053_p7 }
 0x2a6   : > { %p2060_p13 = por %p2059_p12, %p2058_p11 }
 0x2a8   : > { %p2061_p0 = pnand %p2060_p13, %p2054_p8 }
 0x2aa   : > { %2064 = shalt.err (!%p2061_p0)
}
 0x2ab   : > { %1994 = dma.vmem_to_hbm [thread:$0]  (%p2172_p5), %s2590_s14, 64, %s2588_s17, %s1736_s23  }
 0x2ac PF: > { %p2000_p1 = scmp.ge.s32.totalorder %s2099_s21, 2  ;;  %s1762_s12 = sand.u32 1, %s2087_s18  }
 0x2ad   : > { %s1763_s13 = scalar_lea.sflag [#allocation3], %s1762_s12 }
 0x2ae   : > { %p1997_p2 = pnand %p2000_p1, %p2176_p6 }
 0x2b0   : > { %2082 = dma.done.wait (!%p1997_p2), %s1763_s13, 64  }
 0x2b1   : > { %2084 = vsyncadd (!%p1997_p2), %s1763_s13, 4294967232  ;;  %p15_p3 = scmp.ge.s32.totalorder %s2159_s24, 4   ;;  %s2638_s18 = smov %s2091_s19 }
 0x2b2   : > { %s2639_s19 = smov %s2095_s20  ;;  %s2640_s20 = smov %s2170_s27 }
 0x2b3   : > { %s2641_s21 = smov %s2159_s24  ;;  %17 = sbr.rel (!%p15_p3) target bundleno = 3 (0x3), region = 75 }
 0x2ba   :  { %1768 = vsyncpa [#allocation3], 1 }
 0x2bb   :  { %1770 = vsyncpa [#allocation3 + $0x1], 1 }

</bundles_post_ra>
